<compile_context>
chip_gen: v7x
topology: tpu7x:2x2x1
jax: 0.10.0
libtpu: 0.0.40
codegen_flags: <defaults>
</compile_context>

<pallas_src>
import jax
import jax.numpy as jnp
from jax.experimental import pallas as pl
from jax.experimental.pallas import tpu as pltpu

_NEG_BIG = -1.0e30   # acts as -inf for the padded (fake) classes; keep f32


def _cdiv(a, b):
    return -(-a // b)


def _linear_softmax_kernel(x_ref, w_ref, b_ref, o_ref):
    # One MXU pass (no K loop) with f32 accumulation, bias added once, then a
    # numerically stable softmax over the lane-dense padded class axis.
    logits = jnp.dot(x_ref[...], w_ref[...],
                     preferred_element_type=jnp.float32) + b_ref[...]
    m = jnp.max(logits, axis=-1, keepdims=True)
    e = jnp.exp(logits - m)
    denom = jnp.sum(e, axis=-1, keepdims=True)
    probs = e / denom                      # exact divide: rows sum to 1
    n_class = o_ref.shape[-1]              # static (== real C)
    o_ref[...] = probs[:, :n_class].astype(o_ref.dtype)


def linear_classifier_aum(x, w, b, *, block_b=1024, vmem_limit_bytes=None):
    """softmax(x @ w + b, axis=1).

    x: (B, D), w: (D, C), b: (C,)  ->  probs (B, C) float32.
    Matches PyTorch softmax(nn.Linear(D, C)(x), dim=1) with weight stored as
    W (D, C) so logits = x @ W + b.
    """
    B, D = x.shape
    C = w.shape[1]

    # --- lane-dense padded class axis (exactly 128 wide for C=10) ----------
    c_pad = max(128, ((C + 127) // 128) * 128)
    w_p = jnp.zeros((D, c_pad), dtype=w.dtype).at[:, :C].set(w)
    # Pad bias is very negative f32 so padded classes get exp() == 0.  Never
    # cast this to bf16.
    b_p = jnp.full((1, c_pad), _NEG_BIG, dtype=jnp.float32)
    b_p = b_p.at[0, :C].set(b.astype(jnp.float32))

    # W follows x's dtype (tiny + resident).  x itself is never re-cast here:
    # an astype on x would cost a full extra HBM pass over the big array.
    w_in = w_p.astype(x.dtype)

    # --- batch tiling (no whole-array pad; ragged last block is masked) ----
    sub = 16 if x.dtype == jnp.dtype(jnp.bfloat16) else 8
    tm = max(sub, min(block_b, B))
    tm = ((tm + sub - 1) // sub) * sub
    n_tiles = _cdiv(B, tm)
    if n_tiles == 1 and B >= 2 * sub:
        # Ensure >= 2 grid steps so both v7x TensorCores get work.
        tm = ((_cdiv(B, 2) + sub - 1) // sub) * sub
        n_tiles = _cdiv(B, tm)
    grid = (n_tiles,)

    # --- VMEM budget hint (only when the caller pushes tiles past defaults) -
    if vmem_limit_bytes is None:
        est = (2 * tm * D * x.dtype.itemsize        # double-buffered x tiles
               + 2 * D * c_pad * w_in.dtype.itemsize  # resident W (+ spare buf)
               + 2 * tm * C * 4                       # output tiles
               + 2 * c_pad * 4)                       # bias
        if est > (15 << 20):
            vmem_limit_bytes = min(est + (8 << 20), 64 << 20)

    out = pl.pallas_call(
        _linear_softmax_kernel,
        out_shape=jax.ShapeDtypeStruct((B, C), jnp.float32),
        grid_spec=pl.GridSpec(
            grid=grid,
            in_specs=[
                pl.BlockSpec((tm, D), lambda i: (i, 0)),      # x tile (pipelined)
                pl.BlockSpec((D, c_pad), lambda i: (0, 0)),   # W: constant idx -> resident
                pl.BlockSpec((1, c_pad), lambda i: (0, 0)),   # bias: resident
            ],
            out_specs=pl.BlockSpec((tm, C), lambda i: (i, 0)),  # direct (B, C) write
        ),
        compiler_params=pltpu.CompilerParams(
            dimension_semantics=("parallel",),    # batch tiles split across TCs
            vmem_limit_bytes=vmem_limit_bytes),
    )(x, w_in, b_p)

    return out


if __name__ == "__main__":
    key = jax.random.PRNGKey(0)
    kx, kw, kb = jax.random.split(key, 3)

    # Shapes implied by the module: input_dim=784, n_class=10.  Batch kept
    # small (256) but large enough to exercise a 2-step 'parallel' batch grid.
    B, D, C = 256, 784, 10

    # Synthetic "pixel" data in [0, 1], mimicking X = df / 255.
    x = jax.random.uniform(kx, (B, D), dtype=jnp.float32)

    # Deterministic nn.Linear-style init: U(-1/sqrt(D), 1/sqrt(D)).
    bound = 1.0 / jnp.sqrt(jnp.float32(D))
    w = jax.random.uniform(kw, (D, C), minval=-bound, maxval=bound,
                           dtype=jnp.float32)
    b = jax.random.uniform(kb, (C,), minval=-bound, maxval=bound,
                           dtype=jnp.float32)

    ref = jax.nn.softmax(x @ w + b, axis=1)

    # Main path (default tiling).
    probs = jax.block_until_ready(linear_classifier_aum(x, w, b))
    assert probs.shape == (B, C)
    assert jnp.allclose(probs, ref, atol=1e-4, rtol=1e-4), "mismatch vs reference"
    assert jnp.allclose(jnp.sum(probs, axis=1), 1.0, atol=1e-4), "rows must sum to 1"

    # Ragged-batch path: B not a multiple of the tile, no wrapper-side pad.
    Br = 200
    probs_r = jax.block_until_ready(
        linear_classifier_aum(x[:Br], w, b, block_b=64))
    assert probs_r.shape == (Br, C)
    assert jnp.allclose(probs_r, ref[:Br], atol=1e-4, rtol=1e-4), "ragged tail mismatch"
    assert jnp.allclose(jnp.sum(probs_r, axis=1), 1.0, atol=1e-4)

    print("KERNEL_OK")
</pallas_src>

<mosaic_0001>
module attributes {stable_mosaic.version = 11 : i64} {
  func.func @_linear_softmax_kernel(%arg0: i32, %arg1: memref<128x784xf32, #tpu.memory_space<vmem>>, %arg2: memref<784x128xf32, #tpu.memory_space<vmem>>, %arg3: memref<1x128xf32, #tpu.memory_space<vmem>>, %arg4: memref<128x10xf32, #tpu.memory_space<vmem>>) attributes {dimension_semantics = [#tpu.dimension_semantics<parallel>], iteration_bounds = array<i64: 2>, scalar_prefetch = 0 : i64, scratch_operands = 0 : i64, tpu.core_type = #tpu.core_type<tc>, window_params = [{transform_indices = @transform_0, window_bounds = array<i64: 128, 784>}, {pipeline_mode = #tpu.pipeline_mode<synchronous>, transform_indices = @transform_1, window_bounds = array<i64: 784, 128>}, {pipeline_mode = #tpu.pipeline_mode<synchronous>, transform_indices = @transform_2, window_bounds = array<i64: 1, 128>}, {transform_indices = @transform_3, window_bounds = array<i64: 128, 10>}]} {
    %c0 = arith.constant 0 : index
    %c0_0 = arith.constant 0 : index
    %0 = vector.load %arg1[%c0, %c0_0] : memref<128x784xf32, #tpu.memory_space<vmem>>, vector<128x784xf32>
    %c0_1 = arith.constant 0 : index
    %c0_2 = arith.constant 0 : index
    %1 = vector.load %arg2[%c0_1, %c0_2] : memref<784x128xf32, #tpu.memory_space<vmem>>, vector<784x128xf32>
    %cst = arith.constant dense<0.000000e+00> : vector<128x128xf32>
    %2 = tpu.matmul %0, %1, %cst {dimension_numbers = #tpu.dot_dimension_numbers<[1], [0], [0], [1], [0, 0, 1, 1], [], []>} : vector<128x784xf32>, vector<784x128xf32>, vector<128x128xf32> -> vector<128x128xf32>
    %c0_3 = arith.constant 0 : index
    %c0_4 = arith.constant 0 : index
    %3 = vector.load %arg3[%c0_3, %c0_4] : memref<1x128xf32, #tpu.memory_space<vmem>>, vector<1x128xf32>
    %4 = vector.broadcast %3 : vector<1x128xf32> to vector<128x128xf32>
    %5 = arith.addf %2, %4 : vector<128x128xf32>
    %cst_5 = arith.constant dense<0xFF800000> : vector<128xf32>
    %6 = vector.multi_reduction <maximumf>, %5, %cst_5 [1] : vector<128x128xf32> to vector<128xf32>
    %7 = vector.shape_cast %6 : vector<128xf32> to vector<128x1xf32>
    %8 = vector.broadcast %7 : vector<128x1xf32> to vector<128x128xf32>
    %9 = arith.subf %5, %8 : vector<128x128xf32>
    %10 = math.exp %9 : vector<128x128xf32>
    %cst_6 = arith.constant dense<0.000000e+00> : vector<128xf32>
    %11 = vector.multi_reduction <add>, %10, %cst_6 [1] : vector<128x128xf32> to vector<128xf32>
    %12 = vector.shape_cast %11 : vector<128xf32> to vector<128x1xf32>
    %13 = vector.broadcast %12 : vector<128x1xf32> to vector<128x128xf32>
    %14 = arith.divf %10, %13 : vector<128x128xf32>
    %15 = vector.extract_strided_slice %14 {offsets = [0, 0], sizes = [128, 10], strides = [1, 1]} : vector<128x128xf32> to vector<128x10xf32>
    %c0_7 = arith.constant 0 : index
    %c0_8 = arith.constant 0 : index
    %16 = vector.load %arg4[%c0_7, %c0_8] : memref<128x10xf32, #tpu.memory_space<vmem>>, vector<128x10xf32>
    tpu.vector_store %arg4[%c0_7, %c0_8], %15 {strides = array<i32>} : memref<128x10xf32, #tpu.memory_space<vmem>>, vector<128x10xf32>,
    return
  }
  func.func @transform_0(%arg0: i32) -> (i32, i32) {
    %c0_i32 = arith.constant 0 : i32
    %c0_i32_0 = arith.constant 0 : i32
    return %arg0, %c0_i32 : i32, i32
  }
  func.func @transform_1(%arg0: i32) -> (i32, i32) {
    %c0_i32 = arith.constant 0 : i32
    %c0_i32_0 = arith.constant 0 : i32
    %c0_i32_1 = arith.constant 0 : i32
    return %c0_i32, %c0_i32_0 : i32, i32
  }
  func.func @transform_2(%arg0: i32) -> (i32, i32) {
    %c0_i32 = arith.constant 0 : i32
    %c0_i32_0 = arith.constant 0 : i32
    %c0_i32_1 = arith.constant 0 : i32
    return %c0_i32, %c0_i32_0 : i32, i32
  }
  func.func @transform_3(%arg0: i32) -> (i32, i32) {
    %c0_i32 = arith.constant 0 : i32
    %c0_i32_0 = arith.constant 0 : i32
    return %arg0, %c0_i32 : i32, i32
  }
}

</mosaic_0001>

<bundles_post_ra>
// kernel: tpu_custom_call.1
= control target key start
LH: loop header
LB: loop body
LE: loop exit
PB: predicated region body
PF: predicated region fallthrough
CT: control target
= control target key end

     0   :  { %s1771_s12 = smov 0   ;;  %s2457_s0 = inlined_call_operand.vmem [shape: f32[256,784], index: 0, kind: input, shape index: {}]   ;;  %s2458_s1 = inlined_call_operand.vmem [shape: f32[784,128], index: 1, kind: input, shape index: {}]   ;;  %s2459_s2 = inlined_call_operand.vmem [shape: f32[1,128], index: 2, kind: input, shape index: {}]   ;;  %s2460_s3 = inlined_call_operand.vmem [shape: f32[256,10], index: 3, kind: output, shape index: {}]  }
   0x1 LB: > { %s1240_s13 = sadd.s32 4294967295, %s1749_s12   ;;  %p1244_p0 = scmp.ge.s32.totalorder %s1749_s12, 1  ;;  %s1749_s12 = sphi %s1771_s12, %s13_s12  }
   0x2   : > { %p139_p1 = scmp.lt.s32.totalorder %s1749_s12, 3 }
   0x4   : > { %p140_p2 = pnand %p1244_p0, %p139_p1 }
   0x5   : > { %v305_v0 = vld [vmem:[%s2458_s1 + $0x80] sm:$0xff] (!%p140_p2)  ;;  %v306_v1 = vld [vmem:[%s2458_s1 + $0x88] sm:$0xff] (!%p140_p2)  ;;  %v307_v11 = vld [vmem:[%s2458_s1 + $0x90] sm:$0xff] (!%p140_p2)  ;;  %s1815_s11 = sshll.u32 (!%p140_p2), %s1240_s13, 4  ;;  %vm394_vm0 = vcmask (!%p140_p2), 130048   ;;  %vm1167_vm1 = vcmask (!%p140_p2), 80896  }
   0x6   : > { %143 = sbr.rel (%p140_p2) target bundleno = 685 (0x2ad), region = 32  ;;  %v337_v2 = vld [vmem:[%s2458_s1 + $0x180] sm:$0xff] (!%p140_p2)  ;;  %v1554_v3 = vpack.c.bf16 (!%p140_p2), %v306_v1, %v305_v0  ;;  %v338_v4 = vld [vmem:[%s2458_s1 + $0x188] sm:$0xff] (!%p140_p2)  ;;  %v308_v13 = vld [vmem:[%s2458_s1 + $0x98] sm:$0xff] (!%p140_p2)  ;;  %p165_p3 = scmp.lt.s32.totalorder (!%p140_p2), %s1815_s11, 31 }
   0x7   : > { %v289_v5 = vld [vmem:[%s2458_s1] sm:$0xff] (!%p140_p2)  ;;  %v290_v6 = vld [vmem:[%s2458_s1 + $0x8] sm:$0xff] (!%p140_p2)  ;;  %v1586_v7 = vpack.c.bf16 (!%p140_p2), %v338_v4, %v337_v2  ;;  %v339_v14 = vld [vmem:[%s2458_s1 + $0x190] sm:$0xff] (!%p140_p2)  ;;  %v1558_v16 = vpack.c.bf16 (!%p140_p2), %v308_v13, %v307_v11 }
   0x8   : > { %v1556_v8 = vpack.c.bf16 (!%p140_p2), %v290_v6, %v289_v5  ;;  %v321_v9 = vld [vmem:[%s2458_s1 + $0x100] sm:$0xff] (!%p140_p2)  ;;  %v322_v10 = vld [vmem:[%s2458_s1 + $0x108] sm:$0xff] (!%p140_p2)  ;;  %1555 = vmatprep.subr.bf16.mxu0 (!%p140_p2), %v1554_v3  ;;  %v340_v15 = vld [vmem:[%s2458_s1 + $0x198] sm:$0xff] (!%p140_p2) }
   0x9   : > { %v1588_v12 = vpack.c.bf16 (!%p140_p2), %v322_v10, %v321_v9  ;;  %1587 = vmatprep.subr.bf16.mxu1 (!%p140_p2), %v1586_v7  ;;  %v1590_v17 = vpack.c.bf16 (!%p140_p2), %v340_v15, %v339_v14  ;;  %v291_v18 = vld [vmem:[%s2458_s1 + $0x10] sm:$0xff] (!%p140_p2)  ;;  %v292_v19 = vld [vmem:[%s2458_s1 + $0x18] sm:$0xff] (!%p140_p2)  ;;  %v309_v23 = vld [vmem:[%s2458_s1 + $0xa0] sm:$0xff] (!%p140_p2) }
   0xa   : > { %1557 = vmatpush3.bf16.msra.mxu0 (!%p140_p2), %v1556_v8  ;;  %v323_v20 = vld [vmem:[%s2458_s1 + $0x110] sm:$0xff] (!%p140_p2)  ;;  %v1560_v21 = vpack.c.bf16 (!%p140_p2), %v292_v19, %v291_v18  ;;  %v324_v22 = vld [vmem:[%s2458_s1 + $0x118] sm:$0xff] (!%p140_p2)  ;;  %v310_v24 = vld [vmem:[%s2458_s1 + $0xa8] sm:$0xff] (!%p140_p2) }
   0xb   : > { %1589 = vmatpush3.bf16.msra.mxu1 (!%p140_p2), %v1588_v12  ;;  %1559 = vmatprep.subr.bf16.mxu0 (!%p140_p2), %v1558_v16  ;;  %v1592_v25 = vpack.c.bf16 (!%p140_p2), %v324_v22, %v323_v20  ;;  %v1562_v26 = vpack.c.bf16 (!%p140_p2), %v310_v24, %v309_v23  ;;  %v341_v27 = vld [vmem:[%s2458_s1 + $0x1a0] sm:$0xff] (!%p140_p2)  ;;  %v342_v28 = vld [vmem:[%s2458_s1 + $0x1a8] sm:$0xff] (!%p140_p2)  ;;  %v311_v35 = vld [vmem:[%s2458_s1 + $0xb0] sm:$0xff] (!%p140_p2) }
   0xc   : > { %1591 = vmatprep.subr.bf16.mxu1 (!%p140_p2), %v1590_v17  ;;  %v293_v29 = vld [vmem:[%s2458_s1 + $0x20] sm:$0xff] (!%p140_p2)  ;;  %v1594_v30 = vpack.c.bf16 (!%p140_p2), %v342_v28, %v341_v27  ;;  %v294_v31 = vld [vmem:[%s2458_s1 + $0x28] sm:$0xff] (!%p140_p2)  ;;  %v312_v36 = vld [vmem:[%s2458_s1 + $0xb8] sm:$0xff] (!%p140_p2) }
   0xd   : > { %v325_v32 = vld [vmem:[%s2458_s1 + $0x120] sm:$0xff]  ;;  %v326_v33 = vld [vmem:[%s2458_s1 + $0x128] sm:$0xff]  ;;  %v1564_v34 = vpack.c.bf16 %v294_v31, %v293_v29  ;;  %v343_v37 = vld [vmem:[%s2458_s1 + $0x1b0] sm:$0xff]  ;;  %v1566_v39 = vpack.c.bf16 %v312_v36, %v311_v35  ;;  %s2462_s11 = smov (!%p165_p3, %s1815_s11), 31 }
   0xe   : > { %1561 = vmatpush3.bf16.msra.mxu0 %v1560_v21  ;;  %v1596_v38 = vpack.c.bf16 %v326_v33, %v325_v32  ;;  %v344_v40 = vld [vmem:[%s2458_s1 + $0x1b8] sm:$0xff]  ;;  %v295_v41 = vld [vmem:[%s2458_s1 + $0x30] sm:$0xff]  ;;  %v313_v46 = vld [vmem:[%s2458_s1 + $0xc0] sm:$0xff]  ;;  %s1670_s23 = smul.u32 56, %s2462_s11 }
   0xf   : > { %1593 = vmatpush3.bf16.msra.mxu1 %v1592_v25  ;;  %1563 = vmatprep.subr.bf16.mxu0 %v1562_v26  ;;  %v296_v42 = vld [vmem:[%s2458_s1 + $0x38] sm:$0xff]  ;;  %v1598_v43 = vpack.c.bf16 %v344_v40, %v343_v37  ;;  %v327_v44 = vld [vmem:[%s2458_s1 + $0x130] sm:$0xff]  ;;  %v314_v47 = vld [vmem:[%s2458_s1 + $0xc8] sm:$0xff] }
  0x10   : > { %1595 = vmatprep.subr.bf16.mxu1 %v1594_v30  ;;  %v328_v45 = vld [vmem:[%s2458_s1 + $0x138] sm:$0xff]  ;;  %v345_v48 = vld [vmem:[%s2458_s1 + $0x1c0] sm:$0xff]  ;;  %v346_v49 = vld [vmem:[%s2458_s1 + $0x1c8] sm:$0xff]  ;;  %v1568_v50 = vpack.c.bf16 %v296_v42, %v295_v41  ;;  %v1570_v52 = vpack.c.bf16 %v314_v47, %v313_v46  ;;  %s1941_s18 = scalar_lea.vmem %s2457_s0, %s1670_s23 }
  0x11   : > { %v1600_v51 = vpack.c.bf16 %v328_v45, %v327_v44  ;;  %v297_v53 = vld [vmem:[%s2458_s1 + $0x40] sm:$0xff]  ;;  %v298_v54 = vld [vmem:[%s2458_s1 + $0x48] sm:$0xff]  ;;  %v1602_v56 = vpack.c.bf16 %v346_v49, %v345_v48  ;;  %v315_v58 = vld [vmem:[%s2458_s1 + $0xd0] sm:$0xff] }
  0x12   : > { %1565 = vmatpush3.bf16.msra.mxu0 %v1564_v34  ;;  %v329_v55 = vld [vmem:[%s2458_s1 + $0x140] sm:$0xff]  ;;  %v330_v57 = vld [vmem:[%s2458_s1 + $0x148] sm:$0xff]  ;;  %v316_v59 = vld [vmem:[%s2458_s1 + $0xd8] sm:$0xff]  ;;  %v1572_v62 = vpack.c.bf16 %v298_v54, %v297_v53 }
  0x13   : > { %1597 = vmatpush3.bf16.msra.mxu1 %v1596_v38  ;;  %1567 = vmatprep.subr.bf16.mxu0 %v1566_v39  ;;  %v347_v60 = vld [vmem:[%s2458_s1 + $0x1d0] sm:$0xff]  ;;  %v348_v61 = vld [vmem:[%s2458_s1 + $0x1d8] sm:$0xff]  ;;  %v1604_v63 = vpack.c.bf16 %v330_v57, %v329_v55  ;;  %v1574_v0 = vpack.c.bf16 %v316_v59, %v315_v58  ;;  %v317_v6 = vld [vmem:[%s2458_s1 + $0xe0] sm:$0xff] }
  0x14   : > { %1599 = vmatprep.subr.bf16.mxu1 %v1598_v43  ;;  %v299_v1 = vld [vmem:[%s2458_s1 + $0x50] sm:$0xff]  ;;  %v300_v2 = vld [vmem:[%s2458_s1 + $0x58] sm:$0xff]  ;;  %v1606_v4 = vpack.c.bf16 %v348_v61, %v347_v60  ;;  %v318_v7 = vld [vmem:[%s2458_s1 + $0xe8] sm:$0xff] }
  0x15   : > { %v331_v3 = vld [vmem:[%s2458_s1 + $0x150] sm:$0xff]  ;;  %v332_v5 = vld [vmem:[%s2458_s1 + $0x158] sm:$0xff]  ;;  %v349_v8 = vld [vmem:[%s2458_s1 + $0x1e0] sm:$0xff]  ;;  %v1576_v10 = vpack.c.bf16 %v300_v2, %v299_v1  ;;  %v1578_v14 = vpack.c.bf16 %v318_v7, %v317_v6 }
  0x16   : > { %1569 = vmatpush3.bf16.msra.mxu0 %v1568_v50  ;;  %v350_v9 = vld [vmem:[%s2458_s1 + $0x1e8] sm:$0xff]  ;;  %v301_v11 = vld [vmem:[%s2458_s1 + $0x60] sm:$0xff]  ;;  %v1608_v13 = vpack.c.bf16 %v332_v5, %v331_v3  ;;  %v180_v17 = vld [vmem:[%s1941_s18 + $0x18] sm:$0xff] }
  0x17   : > { %1601 = vmatpush3.bf16.msra.mxu1 %v1600_v51  ;;  %1571 = vmatprep.subr.bf16.mxu0 %v1570_v52  ;;  %v302_v12 = vld [vmem:[%s2458_s1 + $0x68] sm:$0xff]  ;;  %v333_v15 = vld [vmem:[%s2458_s1 + $0x160] sm:$0xff]  ;;  %v1610_v18 = vpack.c.bf16 %v350_v9, %v349_v8  ;;  %v319_v20 = vld [vmem:[%s2458_s1 + $0xf0] sm:$0xff] }
  0x18   : > { %1603 = vmatprep.subr.bf16.mxu1 %v1602_v56  ;;  %v178_v16 = vld [vmem:[%s1941_s18 + $0x8] sm:$0xff]  ;;  %v320_v21 = vld [vmem:[%s2458_s1 + $0xf8] sm:$0xff]  ;;  %v351_v22 = vld [vmem:[%s2458_s1 + $0x1f0] sm:$0xff]  ;;  %652 = vmatprep.mubr.f32.mxu1 %v180_v17  ;;  %v1580_v24 = vpack.c.bf16 %v302_v12, %v301_v11 }
  0x19   : > { %v334_v19 = vld [vmem:[%s2458_s1 + $0x168] sm:$0xff]  ;;  %507 = vmatprep.mubr.f32.mxu0 %v178_v16  ;;  %v352_v23 = vld [vmem:[%s2458_s1 + $0x1f8] sm:$0xff]  ;;  %v1582_v26 = vpack.c.bf16 %v320_v21, %v319_v20  ;;  %v303_v27 = vld [vmem:[%s2458_s1 + $0x70] sm:$0xff] }
  0x1a   : > { %1573 = vmatpush3.bf16.msra.mxu0 %v1572_v62  ;;  %v1612_v25 = vpack.c.bf16 %v334_v19, %v333_v15  ;;  %v304_v28 = vld [vmem:[%s2458_s1 + $0x78] sm:$0xff]  ;;  %v335_v29 = vld [vmem:[%s2458_s1 + $0x170] sm:$0xff]  ;;  %v1614_v30 = vpack.c.bf16 %v352_v23, %v351_v22  ;;  %v369_v32 = vld [vmem:[%s2458_s1 + $0x280] sm:$0xff] }
  0x1b   : > { %1605 = vmatpush3.bf16.msra.mxu1 %v1604_v63  ;;  %1575 = vmatprep.subr.bf16.mxu0 %v1574_v0  ;;  %v336_v31 = vld [vmem:[%s2458_s1 + $0x178] sm:$0xff]  ;;  %v370_v33 = vld [vmem:[%s2458_s1 + $0x288] sm:$0xff]  ;;  %v1584_v34 = vpack.c.bf16 %v304_v28, %v303_v27  ;;  %v353_v37 = vld [vmem:[%s2458_s1 + $0x200] sm:$0xff] }
  0x1c   : > { %1607 = vmatprep.subr.bf16.mxu1 %v1606_v4  ;;  %v1616_v35 = vpack.c.bf16 %v336_v31, %v335_v29  ;;  %v1618_v36 = vpack.c.bf16 %v370_v33, %v369_v32  ;;  %v354_v38 = vld [vmem:[%s2458_s1 + $0x208] sm:$0xff]  ;;  %v371_v39 = vld [vmem:[%s2458_s1 + $0x290] sm:$0xff]  ;;  %v372_v40 = vld [vmem:[%s2458_s1 + $0x298] sm:$0xff] }
  0x1d   : > { %v177_v41 = vld [vmem:[%s1941_s18] sm:$0xff]  ;;  %v1620_v42 = vpack.c.bf16 %v354_v38, %v353_v37  ;;  %v179_v43 = vld [vmem:[%s1941_s18 + $0x10] sm:$0xff]  ;;  %v1622_v45 = vpack.c.bf16 %v372_v40, %v371_v39  ;;  %v356_v47 = vld [vmem:[%s2458_s1 + $0x218] sm:$0xff] }
  0x1e   : > { %1577 = vmatpush3.bf16.msra.mxu0 %v1576_v10  ;;  %v185_v44 = vld [vmem:[%s1941_s18 + $0x40] sm:$0xff]  ;;  %v355_v46 = vld [vmem:[%s2458_s1 + $0x210] sm:$0xff]  ;;  %v374_v50 = vld [vmem:[%s2458_s1 + $0x2a8] sm:$0xff] }
  0x1f   : > { %1609 = vmatpush3.bf16.msra.mxu1 %v1608_v13  ;;  %1579 = vmatprep.subr.bf16.mxu0 %v1578_v14  ;;  %v187_v48 = vld [vmem:[%s1941_s18 + $0x50] sm:$0xff]  ;;  %v373_v49 = vld [vmem:[%s2458_s1 + $0x2a0] sm:$0xff]  ;;  %v184_v51 = vld [vmem:[%s1941_s18 + $0x38] sm:$0xff]  ;;  %v1624_v54 = vpack.c.bf16 %v356_v47, %v355_v46 }
  0x20   : > { %1611 = vmatprep.subr.bf16.mxu1 %v1610_v18  ;;  %v186_v52 = vld [vmem:[%s1941_s18 + $0x48] sm:$0xff]  ;;  %v192_v53 = vld [vmem:[%s1941_s18 + $0x78] sm:$0xff]  ;;  %v1626_v56 = vpack.c.bf16 %v374_v50, %v373_v49  ;;  %v357_v57 = vld [vmem:[%s2458_s1 + $0x220] sm:$0xff] }
  0x21   : > { %v194_v55 = vld [vmem:[%s1941_s18 + $0x88] sm:$0xff]  ;;  %v375_v59 = vld [vmem:[%s2458_s1 + $0x2b0] sm:$0xff]  ;;  %v376_v60 = vld [vmem:[%s2458_s1 + $0x2b8] sm:$0xff] }
  0x22   : > { %1581 = vmatpush3.bf16.msra.mxu0 %v1580_v24  ;;  %v358_v58 = vld [vmem:[%s2458_s1 + $0x228] sm:$0xff]  ;;  %v191_v61 = vld [vmem:[%s1941_s18 + $0x70] sm:$0xff]  ;;  %v193_v62 = vld [vmem:[%s1941_s18 + $0x80] sm:$0xff]  ;;  %v1630_v2 = vpack.c.bf16 %v376_v60, %v375_v59 }
  0x23   : > { %1613 = vmatpush3.bf16.msra.mxu1 %v1612_v25  ;;  %1583 = vmatprep.subr.bf16.mxu0 %v1582_v26  ;;  %v199_v63 = vld [vmem:[%s1941_s18 + $0xb0] sm:$0xff]  ;;  %v1628_v0 = vpack.c.bf16 %v358_v58, %v357_v57  ;;  %v201_v1 = vld [vmem:[%s1941_s18 + $0xc0] sm:$0xff]  ;;  %v360_v4 = vld [vmem:[%s2458_s1 + $0x238] sm:$0xff] }
  0x24   : > { %1615 = vmatprep.subr.bf16.mxu1 %v1614_v30  ;;  %v359_v3 = vld [vmem:[%s2458_s1 + $0x230] sm:$0xff]  ;;  %v377_v5 = vld [vmem:[%s2458_s1 + $0x2c0] sm:$0xff]  ;;  %v378_v6 = vld [vmem:[%s2458_s1 + $0x2c8] sm:$0xff] }
  0x25   : > { %v198_v7 = vld [vmem:[%s1941_s18 + $0xa8] sm:$0xff]  ;;  %v200_v8 = vld [vmem:[%s1941_s18 + $0xb8] sm:$0xff]  ;;  %v1632_v10 = vpack.c.bf16 %v360_v4, %v359_v3  ;;  %v1634_v12 = vpack.c.bf16 %v378_v6, %v377_v5  ;;  %v361_v13 = vld [vmem:[%s2458_s1 + $0x240] sm:$0xff] }
  0x26   : > { %1585 = vmatpush3.bf16.msra.mxu0 %v1584_v34  ;;  %v206_v9 = vld [vmem:[%s1941_s18 + $0xe8] sm:$0xff]  ;;  %v208_v11 = vld [vmem:[%s1941_s18 + $0xf8] sm:$0xff]  ;;  %v379_v15 = vld [vmem:[%s2458_s1 + $0x2d0] sm:$0xff] }
  0x27   : > { %1617 = vmatpush3.bf16.msra.mxu1 %v1616_v35  ;;  %1619 = vmatprep.subr.bf16.mxu0 %v1618_v36  ;;  %v362_v14 = vld [vmem:[%s2458_s1 + $0x248] sm:$0xff]  ;;  %v380_v16 = vld [vmem:[%s2458_s1 + $0x2d8] sm:$0xff]  ;;  %v205_v17 = vld [vmem:[%s1941_s18 + $0xe0] sm:$0xff] }
  0x28   : > { %1654 = vmatprep.subr.bf16.mxu1 %v1618_v36  ;;  %v207_v18 = vld [vmem:[%s1941_s18 + $0xf0] sm:$0xff]  ;;  %v213_v19 = vld [vmem:[%s1941_s18 + $0x120] sm:$0xff]  ;;  %v1636_v20 = vpack.c.bf16 %v362_v14, %v361_v13  ;;  %v1638_v22 = vpack.c.bf16 %v380_v16, %v379_v15  ;;  %v364_v24 = vld [vmem:[%s2458_s1 + $0x258] sm:$0xff] }
  0x29   : > { %508 = vmatmul.mubr.f32.vlgmr.msra.gmra.mrb[0].mxu0 %v177_v41  ;;  %v215_v21 = vld [vmem:[%s1941_s18 + $0x130] sm:$0xff]  ;;  %v381_v25 = vld [vmem:[%s2458_s1 + $0x2e0] sm:$0xff]  ;;  %v382_v26 = vld [vmem:[%s2458_s1 + $0x2e8] sm:$0xff] }
  0x2a   : > { %653 = vmatmul.mubr.f32.vlgmr.msra.gmra.mrb[0].mxu1 %v179_v43  ;;  %1621 = vmatpush3.bf16.msra.mxu0 %v1620_v42  ;;  %v363_v23 = vld [vmem:[%s2458_s1 + $0x250] sm:$0xff]  ;;  %v212_v27 = vld [vmem:[%s1941_s18 + $0x118] sm:$0xff]  ;;  %v214_v28 = vld [vmem:[%s1941_s18 + $0x128] sm:$0xff]  ;;  %v1642_v32 = vpack.c.bf16 %v382_v26, %v381_v25 }
  0x2b   : > { %1662 = vmatpush3.bf16.msra.mxu1 %v1620_v42  ;;  %512 = vmatprep.mubr.f32.mxu0 %v185_v44  ;;  %v220_v29 = vld [vmem:[%s1941_s18 + $0x158] sm:$0xff]  ;;  %v1640_v30 = vpack.c.bf16 %v364_v24, %v363_v23  ;;  %v222_v31 = vld [vmem:[%s1941_s18 + $0x168] sm:$0xff]  ;;  %v365_v33 = vld [vmem:[%s2458_s1 + $0x260] sm:$0xff] }
  0x2c   : > { %657 = vmatprep.mubr.f32.mxu1 %v187_v48  ;;  %1623 = vmatprep.subr.bf16.mxu0 %v1622_v45  ;;  %v366_v34 = vld [vmem:[%s2458_s1 + $0x268] sm:$0xff]  ;;  %v383_v35 = vld [vmem:[%s2458_s1 + $0x2f0] sm:$0xff]  ;;  %v384_v36 = vld [vmem:[%s2458_s1 + $0x2f8] sm:$0xff] }
  0x2d   : > { %513 = vmatmul.mubr.f32.gmra.mrb[2].mxu0 %v184_v51  ;;  %1655 = vmatprep.subr.bf16.mxu1 %v1622_v45  ;;  %v219_v37 = vld [vmem:[%s1941_s18 + $0x150] sm:$0xff]  ;;  %v221_v38 = vld [vmem:[%s1941_s18 + $0x160] sm:$0xff]  ;;  %v1644_v40 = vpack.c.bf16 %v366_v34, %v365_v33  ;;  %v1646_v42 = vpack.c.bf16 %v384_v36, %v383_v35  ;;  %v368_v44 = vld [vmem:[%s2458_s1 + $0x278] sm:$0xff] }
  0x2e   : > { %658 = vmatmul.mubr.f32.gmra.mrb[2].mxu1 %v186_v52  ;;  %517 = vmatprep.mubr.f32.mxu0 %v192_v53  ;;  %v227_v39 = vld [vmem:[%s1941_s18 + $0x190] sm:$0xff]  ;;  %v229_v41 = vld [vmem:[%s1941_s18 + $0x1a0] sm:$0xff]  ;;  %v226_v45 = vld [vmem:[%s1941_s18 + $0x188] sm:$0xff] }
  0x2f   : > { %662 = vmatprep.mubr.f32.mxu1 %v194_v55  ;;  %1625 = vmatpush3.bf16.msra.mxu0 %v1624_v54  ;;  %v367_v43 = vld [vmem:[%s2458_s1 + $0x270] sm:$0xff]  ;;  %v385_v46 = vld [vmem:[%s2458_s1 + $0x300] sm:$0xff]  ;;  %v386_v47 = vld [vmem:[%s2458_s1 + $0x308] sm:$0xff] }
  0x30   : > { %1663 = vmatpush3.bf16.msra.mxu1 %v1624_v54  ;;  %1627 = vmatprep.subr.bf16.mxu0 %v1626_v56  ;;  %v228_v48 = vld [vmem:[%s1941_s18 + $0x198] sm:$0xff]  ;;  %v234_v49 = vld [vmem:[%s1941_s18 + $0x1c8] sm:$0xff]  ;;  %v1648_v50 = vpack.c.bf16 %v368_v44, %v367_v43  ;;  %v2121_v52 = vpack.c.bf16 %v386_v47, %v385_v46  ;;  %v233_v53 = vld [vmem:[%s1941_s18 + $0x1c0] sm:$0xff] }
  0x31   : > { %518 = vmatmul.mubr.f32.gmra.mrb[4].mxu0 %v191_v61  ;;  %1656 = vmatprep.subr.bf16.mxu1 %v1626_v56  ;;  %v236_v51 = vld [vmem:[%s1941_s18 + $0x1d8] sm:$0xff]  ;;  %v235_v54 = vld [vmem:[%s1941_s18 + $0x1d0] sm:$0xff]  ;;  %v241_v55 = vld [vmem:[%s1941_s18 + $0x200] sm:$0xff] }
  0x32   : > { %663 = vmatmul.mubr.f32.gmra.mrb[4].mxu1 %v193_v62  ;;  %522 = vmatprep.mubr.f32.mxu0 %v199_v63  ;;  %v243_v56 = vld [vmem:[%s1941_s18 + $0x210] sm:$0xff]  ;;  %v240_v57 = vld [vmem:[%s1941_s18 + $0x1f8] sm:$0xff]  ;;  %v242_v58 = vld [vmem:[%s1941_s18 + $0x208] sm:$0xff] }
  0x33   : > { %667 = vmatprep.mubr.f32.mxu1 %v201_v1  ;;  %1629 = vmatpush3.bf16.msra.mxu0 %v1628_v0  ;;  %v248_v59 = vld [vmem:[%s1941_s18 + $0x238] sm:$0xff]  ;;  %v250_v60 = vld [vmem:[%s1941_s18 + $0x248] sm:$0xff]  ;;  %v247_v61 = vld [vmem:[%s1941_s18 + $0x230] sm:$0xff] }
  0x34   : > { %1664 = vmatpush3.bf16.msra.mxu1 %v1628_v0  ;;  %1631 = vmatprep.subr.bf16.mxu0 %v1630_v2  ;;  %v249_v62 = vld [vmem:[%s1941_s18 + $0x240] sm:$0xff]  ;;  %v255_v63 = vld [vmem:[%s1941_s18 + $0x270] sm:$0xff]  ;;  %v254_v1 = vld [vmem:[%s1941_s18 + $0x268] sm:$0xff] }
  0x35   : > { %523 = vmatmul.mubr.f32.gmra.mrb[6].mxu0 %v198_v7  ;;  %1657 = vmatprep.subr.bf16.mxu1 %v1630_v2  ;;  %v257_v0 = vld [vmem:[%s1941_s18 + $0x280] sm:$0xff]  ;;  %v256_v2 = vld [vmem:[%s1941_s18 + $0x278] sm:$0xff]  ;;  %v262_v3 = vld [vmem:[%s1941_s18 + $0x2a8] sm:$0xff] }
  0x36   : > { %668 = vmatmul.mubr.f32.gmra.mrb[6].mxu1 %v200_v8  ;;  %527 = vmatprep.mubr.f32.mxu0 %v206_v9  ;;  %v264_v4 = vld [vmem:[%s1941_s18 + $0x2b8] sm:$0xff]  ;;  %v261_v5 = vld [vmem:[%s1941_s18 + $0x2a0] sm:$0xff]  ;;  %v263_v6 = vld [vmem:[%s1941_s18 + $0x2b0] sm:$0xff] }
  0x37   : > { %672 = vmatprep.mubr.f32.mxu1 %v208_v11  ;;  %1633 = vmatpush3.bf16.msra.mxu0 %v1632_v10  ;;  %v269_v7 = vld [vmem:[%s1941_s18 + $0x2e0] sm:$0xff]  ;;  %v271_v8 = vld [vmem:[%s1941_s18 + $0x2f0] sm:$0xff]  ;;  %v268_v9 = vld [vmem:[%s1941_s18 + $0x2d8] sm:$0xff] }
  0x38   : > { %1665 = vmatpush3.bf16.msra.mxu1 %v1632_v10  ;;  %1635 = vmatprep.subr.bf16.mxu0 %v1634_v12  ;;  %v270_v10 = vld [vmem:[%s1941_s18 + $0x2e8] sm:$0xff]  ;;  %v276_v11 = vld [vmem:[%s1941_s18 + $0x318] sm:$0xff]  ;;  %v275_v13 = vld [vmem:[%s1941_s18 + $0x310] sm:$0xff] }
  0x39   : > { %528 = vmatmul.mubr.f32.gmra.mrb[8].mxu0 %v205_v17  ;;  %1658 = vmatprep.subr.bf16.mxu1 %v1634_v12  ;;  %v278_v12 = vld [vmem:[%s1941_s18 + $0x328] sm:$0xff]  ;;  %v277_v14 = vld [vmem:[%s1941_s18 + $0x320] sm:$0xff]  ;;  %v283_v15 = vld [vmem:[%s1941_s18 + $0x350] sm:$0xff] }
  0x3a   : > { %673 = vmatmul.mubr.f32.gmra.mrb[8].mxu1 %v207_v18  ;;  %532 = vmatprep.mubr.f32.mxu0 %v213_v19  ;;  %v285_v16 = vld [vmem:[%s1941_s18 + $0x360] sm:$0xff]  ;;  %v282_v17 = vld [vmem:[%s1941_s18 + $0x348] sm:$0xff]  ;;  %v284_v18 = vld [vmem:[%s1941_s18 + $0x358] sm:$0xff] }
  0x3b   : > { %677 = vmatprep.mubr.f32.mxu1 %v215_v21  ;;  %1637 = vmatpush3.bf16.msra.mxu0 %v1636_v20  ;;  %v182_v19 = vld [vmem:[%s1941_s18 + $0x28] sm:$0xff]  ;;  %v181_v21 = vld [vmem:[%s1941_s18 + $0x20] sm:$0xff]  ;;  %v188_v25 = vld [vmem:[%s1941_s18 + $0x58] sm:$0xff] }
  0x3c   : > { %1666 = vmatpush3.bf16.msra.mxu1 %v1636_v20  ;;  %1639 = vmatprep.subr.bf16.mxu0 %v1638_v22  ;;  %v266_v20 = vld [vmem:[%s1941_s18 + $0x2c8] sm:$0xff]  ;;  %v189_v23 = vld [vmem:[%s1941_s18 + $0x60] sm:$0xff]  ;;  %v272_v26 = vld [vmem:[%s1941_s18 + $0x2f8] sm:$0xff] }
  0x3d   : > { %533 = vmatmul.mubr.f32.gmra.mrb[10].mxu0 %v212_v27  ;;  %1659 = vmatprep.subr.bf16.mxu1 %v1638_v22  ;;  %v265_v22 = vld [vmem:[%s1941_s18 + $0x2c0] sm:$0xff]  ;;  %v196_v27 = vld [vmem:[%s1941_s18 + $0x98] sm:$0xff]  ;;  %v202_v33 = vld [vmem:[%s1941_s18 + $0xc8] sm:$0xff] }
  0x3e   : > { %678 = vmatmul.mubr.f32.gmra.mrb[10].mxu1 %v214_v28  ;;  %537 = vmatprep.mubr.f32.mxu0 %v220_v29  ;;  %v273_v24 = vld [vmem:[%s1941_s18 + $0x300] sm:$0xff]  ;;  %v280_v28 = vld [vmem:[%s1941_s18 + $0x338] sm:$0xff]  ;;  %v195_v29 = vld [vmem:[%s1941_s18 + $0x90] sm:$0xff] }
  0x3f   : > { %682 = vmatprep.mubr.f32.mxu1 %v222_v31  ;;  %1641 = vmatpush3.bf16.msra.mxu0 %v1640_v30  ;;  %v203_v31 = vld [vmem:[%s1941_s18 + $0xd0] sm:$0xff]  ;;  %v286_v34 = vld [vmem:[%s1941_s18 + $0x368] sm:$0xff]  ;;  %v224_v43 = vld [vmem:[%s1941_s18 + $0x178] sm:$0xff] }
  0x40   : > { %1667 = vmatpush3.bf16.msra.mxu1 %v1640_v30  ;;  %1643 = vmatprep.subr.bf16.mxu0 %v1642_v32  ;;  %v279_v30 = vld [vmem:[%s1941_s18 + $0x330] sm:$0xff]  ;;  %v210_v35 = vld [vmem:[%s1941_s18 + $0x108] sm:$0xff] }
  0x41   : > { %538 = vmatmul.mubr.f32.gmra.mrb[12].mxu0 %v219_v37  ;;  %1660 = vmatprep.subr.bf16.mxu1 %v1642_v32  ;;  %v287_v32 = vld [vmem:[%s1941_s18 + $0x370] sm:$0xff]  ;;  %v209_v37 = vld [vmem:[%s1941_s18 + $0x100] sm:$0xff]  ;;  %v218_v46 = vld [vmem:[%s1941_s18 + $0x148] sm:$0xff] }
  0x42   : > { %683 = vmatmul.mubr.f32.gmra.mrb[12].mxu1 %v221_v38  ;;  %542 = vmatprep.mubr.f32.mxu0 %v227_v39  ;;  %v183_v36 = vld [vmem:[%s1941_s18 + $0x30] sm:$0xff]  ;;  %v190_v38 = vld [vmem:[%s1941_s18 + $0x68] sm:$0xff]  ;;  %v217_v39 = vld [vmem:[%s1941_s18 + $0x140] sm:$0xff] }
  0x43   : > { %687 = vmatprep.mubr.f32.mxu1 %v229_v41  ;;  %1645 = vmatpush3.bf16.msra.mxu0 %v1644_v40  ;;  %v216_v41 = vld [vmem:[%s1941_s18 + $0x138] sm:$0xff]  ;;  %v211_v44 = vld [vmem:[%s1941_s18 + $0x110] sm:$0xff] }
  0x44   : > { %1668 = vmatpush3.bf16.msra.mxu1 %v1644_v40  ;;  %1647 = vmatprep.subr.bf16.mxu0 %v1646_v42  ;;  %v197_v40 = vld [vmem:[%s1941_s18 + $0xa0] sm:$0xff]  ;;  %v231_v47 = vld [vmem:[%s1941_s18 + $0x1b0] sm:$0xff] }
  0x45   : > { %543 = vmatmul.mubr.f32.gmra.mrb[14].mxu0 %v226_v45  ;;  %1661 = vmatprep.subr.bf16.mxu1 %v1646_v42  ;;  %v204_v42 = vld [vmem:[%s1941_s18 + $0xd8] sm:$0xff]  ;;  %v223_v45 = vld [vmem:[%s1941_s18 + $0x170] sm:$0xff] }
  0x46   : > { %688 = vmatmul.mubr.f32.gmra.mrb[14].mxu1 %v228_v48  ;;  %547 = vmatprep.mubr.f32.mxu0 %v234_v49  ;;  %v225_v48 = vld [vmem:[%s1941_s18 + $0x180] sm:$0xff]  ;;  %v230_v49 = vld [vmem:[%s1941_s18 + $0x1a8] sm:$0xff] }
  0x47   : > { %692 = vmatprep.mubr.f32.mxu1 %v236_v51  ;;  %1649 = vmatpush3.bf16.msra.mxu0 %v1648_v50  ;;  %v238_v51 = vld [vmem:[%s1941_s18 + $0x1e8] sm:$0xff] }
  0x48   : > { %1669 = vmatpush3.bf16.msra.mxu1 %v1648_v50  ;;  %v232_v50 = vld [vmem:[%s1941_s18 + $0x1b8] sm:$0xff] }
  0x49   : > { %548 = vmatmul.mubr.f32.gmra.mrb[16].mxu0 %v233_v53  ;;  %1651 = vmatprep.subr.bf16.mxu1 %v2121_v52  ;;  %v237_v53 = vld [vmem:[%s1941_s18 + $0x1e0] sm:$0xff] }
  0x4a   : > { %693 = vmatmul.mubr.f32.gmra.mrb[16].mxu1 %v235_v54  ;;  %552 = vmatprep.mubr.f32.mxu0 %v241_v55  ;;  %v246_v54 = vld [vmem:[%s1941_s18 + $0x228] sm:$0xff]  ;;  %v245_v55 = vld [vmem:[%s1941_s18 + $0x220] sm:$0xff] }
  0x4b   : > { %697 = vmatprep.mubr.f32.mxu1 %v243_v56  ;;  %v253_v56 = vld [vmem:[%s1941_s18 + $0x260] sm:$0xff] }
  0x4d   : > { %553 = vmatmul.mubr.f32.gmra.mrb[18].mxu0 %v240_v57  ;;  %v244_v57 = vld [vmem:[%s1941_s18 + $0x218] sm:$0xff] }
  0x4e   : > { %698 = vmatmul.mubr.f32.gmra.mrb[18].mxu1 %v242_v58  ;;  %557 = vmatprep.mubr.f32.mxu0 %v248_v59  ;;  %v260_v58 = vld [vmem:[%s1941_s18 + $0x298] sm:$0xff] }
  0x4f   : > { %702 = vmatprep.mubr.f32.mxu1 %v250_v60  ;;  %v252_v59 = vld [vmem:[%s1941_s18 + $0x258] sm:$0xff]  ;;  %v267_v60 = vld [vmem:[%s1941_s18 + $0x2d0] sm:$0xff] }
  0x51   : > { %558 = vmatmul.mubr.f32.gmra.mrb[20].mxu0 %v247_v61  ;;  %v251_v61 = vld [vmem:[%s1941_s18 + $0x250] sm:$0xff] }
  0x52   : > { %703 = vmatmul.mubr.f32.gmra.mrb[20].mxu1 %v249_v62  ;;  %562 = vmatprep.mubr.f32.mxu0 %v255_v63  ;;  %v274_v62 = vld [vmem:[%s1941_s18 + $0x308] sm:$0xff]  ;;  %v259_v63 = vld [vmem:[%s1941_s18 + $0x290] sm:$0xff] }
  0x53   : > { %707 = vmatprep.mubr.f32.mxu1 %v257_v0  ;;  %v281_v0 = vld [vmem:[%s1941_s18 + $0x340] sm:$0xff] }
  0x55   : > { %563 = vmatmul.mubr.f32.gmra.mrb[22].mxu0 %v254_v1  ;;  %v258_v1 = vld [vmem:[%s1941_s18 + $0x288] sm:$0xff] }
  0x56   : > { %708 = vmatmul.mubr.f32.gmra.mrb[22].mxu1 %v256_v2  ;;  %567 = vmatprep.mubr.f32.mxu0 %v262_v3  ;;  %v288_v2 = vld [vmem:[%s1941_s18 + $0x378] sm:$0xff] }
  0x57   : > { %712 = vmatprep.mubr.f32.mxu1 %v264_v4  ;;  %v2222_v4 = vld [vmem:[%s2459_s2] ss:$0 sm:$0xff] }
  0x59   : > { %568 = vmatmul.mubr.f32.gmra.mrb[24].mxu0 %v261_v5 }
  0x5a   : > { %713 = vmatmul.mubr.f32.gmra.mrb[24].mxu1 %v263_v6  ;;  %572 = vmatprep.mubr.f32.mxu0 %v269_v7 }
  0x5b   : > { %717 = vmatprep.mubr.f32.mxu1 %v271_v8 }
  0x5d   : > { %573 = vmatmul.mubr.f32.gmra.mrb[26].mxu0 %v268_v9 }
  0x5e   : > { %718 = vmatmul.mubr.f32.gmra.mrb[26].mxu1 %v270_v10  ;;  %577 = vmatprep.mubr.f32.mxu0 %v276_v11 }
  0x5f   : > { %722 = vmatprep.mubr.f32.mxu1 %v278_v12 }
  0x61   : > { %578 = vmatmul.mubr.f32.gmra.mrb[28].mxu0 %v275_v13 }
  0x62   : > { %723 = vmatmul.mubr.f32.gmra.mrb[28].mxu1 %v277_v14  ;;  %582 = vmatprep.mubr.f32.mxu0 %v283_v15 }
  0x63   : > { %727 = vmatprep.mubr.f32.mxu1 %v285_v16 }
  0x65   : > { %583 = vmatmul.mubr.f32.gmra.mrb[30].mxu0 %v282_v17 }
  0x66   : > { %728 = vmatmul.mubr.f32.gmra.mrb[30].mxu1 %v284_v18  ;;  %797 = vmatprep.mubr.f32.mxu0 %v182_v19 }
  0x67   : > { %857 = vmatprep.mubr.f32.mxu1 %v266_v20 }
  0x69   : > { %798 = vmatmul.mubr.f32.vlgmr.msra.gmra.mrb[32].mxu0 %v181_v21 }
  0x6a   : > { %858 = vmatmul.mubr.f32.vlgmr.msra.gmra.mrb[32].mxu1 %v265_v22  ;;  %802 = vmatprep.mubr.f32.mxu0 %v189_v23 }
  0x6b   : > { %1653 = vmatpush3.bf16.msra.mxu1 %v2121_v52  ;;  %862 = vmatprep.mubr.f32.mxu1 %v273_v24  ;;  %v239_v52 = vld [vmem:[%s1941_s18 + $0x1f0] sm:$0xff]  ;;  %s1248_s18 = sshll.u32 %s2462_s11, 3 }
  0x6c   : > { %s2404_s22 = scalar_lea.vmem %s2460_s3, %s1248_s18 }
  0x6d   : > { %803 = vmatmul.mubr.f32.gmra.mrb[34].mxu0 %v188_v25 }
  0x6e   : > { %863 = vmatmul.mubr.f32.gmra.mrb[34].mxu1 %v272_v26  ;;  %807 = vmatprep.mubr.f32.mxu0 %v196_v27 }
  0x6f   : > { %867 = vmatprep.mubr.f32.mxu1 %v280_v28 }
  0x71   : > { %808 = vmatmul.mubr.f32.gmra.mrb[36].mxu0 %v195_v29 }
  0x72   : > { %868 = vmatmul.mubr.f32.gmra.mrb[36].mxu1 %v279_v30  ;;  %812 = vmatprep.mubr.f32.mxu0 %v203_v31 }
  0x73   : > { %872 = vmatprep.mubr.f32.mxu1 %v287_v32 }
  0x75   : > { %813 = vmatmul.mubr.f32.gmra.mrb[38].mxu0 %v202_v33 }
  0x76   : > { %873 = vmatmul.mubr.f32.gmra.mrb[38].mxu1 %v286_v34  ;;  %817 = vmatprep.mubr.f32.mxu0 %v210_v35 }
  0x77   : > { %1530 = vmatprep.mubr.msk.f32.mxu1 %vm394_vm0, %v183_v36 }
  0x79   : > { %818 = vmatmul.mubr.f32.gmra.mrb[40].mxu0 %v209_v37 }
  0x7a   : > { %1531 = vmatmul.mubr.msk.f32.vlgmr.msra.gmra.mrb[40].mxu1 %vm394_vm0, %v190_v38  ;;  %822 = vmatprep.mubr.f32.mxu0 %v217_v39 }
  0x7b   : > { %1533 = vmatprep.mubr.msk.f32.mxu1 %vm394_vm0, %v197_v40 }
  0x7d   : > { %823 = vmatmul.mubr.f32.gmra.mrb[42].mxu0 %v216_v41 }
  0x7e   : > { %1534 = vmatmul.mubr.msk.f32.gmra.mrb[42].mxu1 %vm394_vm0, %v204_v42  ;;  %827 = vmatprep.mubr.f32.mxu0 %v224_v43 }
  0x7f   : > { %1536 = vmatprep.mubr.msk.f32.mxu1 %vm394_vm0, %v211_v44 }
  0x81   : > { %828 = vmatmul.mubr.f32.gmra.mrb[44].mxu0 %v223_v45 }
  0x82   : > { %1537 = vmatmul.mubr.msk.f32.gmra.mrb[44].mxu1 %vm394_vm0, %v218_v46  ;;  %832 = vmatprep.mubr.f32.mxu0 %v231_v47 }
  0x83   : > { %1539 = vmatprep.mubr.msk.f32.mxu1 %vm394_vm0, %v225_v48 }
  0x85   : > { %833 = vmatmul.mubr.f32.gmra.mrb[46].mxu0 %v230_v49 }
  0x86   : > { %1540 = vmatmul.mubr.msk.f32.gmra.mrb[46].mxu1 %vm394_vm0, %v232_v50  ;;  %837 = vmatprep.mubr.f32.mxu0 %v238_v51 }
  0x87   : > { %1542 = vmatprep.mubr.msk.f32.mxu1 %vm394_vm0, %v239_v52 }
  0x89   : > { %838 = vmatmul.mubr.f32.gmra.mrb[48].mxu0 %v237_v53 }
  0x8a   : > { %1543 = vmatmul.mubr.msk.f32.gmra.mrb[48].mxu1 %vm394_vm0, %v246_v54  ;;  %842 = vmatprep.mubr.f32.mxu0 %v245_v55 }
  0x8b   : > { %1545 = vmatprep.mubr.msk.f32.mxu1 %vm394_vm0, %v253_v56 }
  0x8d   : > { %843 = vmatmul.mubr.f32.gmra.mrb[50].mxu0 %v244_v57 }
  0x8e   : > { %1546 = vmatmul.mubr.msk.f32.gmra.mrb[50].mxu1 %vm394_vm0, %v260_v58  ;;  %847 = vmatprep.mubr.f32.mxu0 %v252_v59 }
  0x8f   : > { %1548 = vmatprep.mubr.msk.f32.mxu1 %vm394_vm0, %v267_v60 }
  0x91   : > { %848 = vmatmul.mubr.f32.gmra.mrb[52].mxu0 %v251_v61 }
  0x92   : > { %1549 = vmatmul.mubr.msk.f32.gmra.mrb[52].mxu1 %vm394_vm0, %v274_v62  ;;  %852 = vmatprep.mubr.f32.mxu0 %v259_v63 }
  0x93   : > { %1551 = vmatprep.mubr.msk.f32.mxu1 %vm394_vm0, %v281_v0 }
  0x95   : > { %853 = vmatmul.mubr.f32.gmra.mrb[54].mxu0 %v258_v1 }
  0x96   : > { %1552 = vmatmul.mubr.msk.f32.gmra.mrb[54].mxu1 %vm394_vm0, %v288_v2 }
  0xfc   : > { %v1300_v3 = vpop.f32.mrb[0].mxu0 }
  0xfd   : > { %v1301_v5 = vpop.f32.mrb[1].mxu0  ;;  %v1380_v6 = vpop.f32.mrb[0].mxu1 }
  0xfe   : > { %v1302_v7 = vadd.f32 %v1301_v5, %v1300_v3  ;;  %v1381_v8 = vpop.f32.mrb[1].mxu1 }
  0xff   : > { %v1382_v9 = vadd.f32 %v1381_v8, %v1380_v6 }
 0x100   : > { %v510_v10 = vadd.f32 %v1302_v7, %v2222_v4  ;;  %v1303_v11 = vpop.f32.mrb[2].mxu0 }
 0x101   : > { %v1304_v12 = vpop.f32.mrb[3].mxu0  ;;  %v1383_v13 = vpop.f32.mrb[2].mxu1 }
 0x102   : > { %v2225_v14 = vadd.f32 %v1382_v9, %v510_v10  ;;  %v1305_v15 = vadd.f32 %v1304_v12, %v1303_v11  ;;  %v1384_v16 = vpop.f32.mrb[3].mxu1 }
 0x103   : > { %v1385_v17 = vadd.f32 %v1384_v16, %v1383_v13 }
 0x104   : > { %v515_v18 = vadd.f32 %v1305_v15, %v2222_v4  ;;  %v1306_v19 = vpop.f32.mrb[4].mxu0 }
 0x105   : > { %v1307_v20 = vpop.f32.mrb[5].mxu0  ;;  %v1386_v21 = vpop.f32.mrb[4].mxu1 }
 0x106   : > { %v2228_v22 = vadd.f32 %v1385_v17, %v515_v18  ;;  %v1308_v23 = vadd.f32 %v1307_v20, %v1306_v19  ;;  %v1387_v24 = vpop.f32.mrb[5].mxu1 }
 0x107   : > { %v1388_v25 = vadd.f32 %v1387_v24, %v1386_v21 }
 0x108   : > { %v520_v26 = vadd.f32 %v1308_v23, %v2222_v4  ;;  %v1309_v27 = vpop.f32.mrb[6].mxu0 }
 0x109   : > { %v1310_v28 = vpop.f32.mrb[7].mxu0  ;;  %v1389_v29 = vpop.f32.mrb[6].mxu1 }
 0x10a   : > { %v2231_v30 = vadd.f32 %v1388_v25, %v520_v26  ;;  %v1311_v31 = vadd.f32 %v1310_v28, %v1309_v27  ;;  %v1390_v32 = vpop.f32.mrb[7].mxu1 }
 0x10b   : > { %v1391_v33 = vadd.f32 %v1390_v32, %v1389_v29 }
 0x10c   : > { %v525_v34 = vadd.f32 %v1311_v31, %v2222_v4  ;;  %v1312_v35 = vpop.f32.mrb[8].mxu0 }
 0x10d   : > { %v1313_v36 = vpop.f32.mrb[9].mxu0  ;;  %v1392_v37 = vpop.f32.mrb[8].mxu1 }
 0x10e   : > { %v2234_v38 = vadd.f32 %v1391_v33, %v525_v34  ;;  %v1314_v39 = vadd.f32 %v1313_v36, %v1312_v35  ;;  %v1393_v40 = vpop.f32.mrb[9].mxu1 }
 0x10f   : > { %v1394_v41 = vadd.f32 %v1393_v40, %v1392_v37 }
 0x110   : > { %v530_v42 = vadd.f32 %v1314_v39, %v2222_v4  ;;  %v1315_v43 = vpop.f32.mrb[10].mxu0 }
 0x111   : > { %v1316_v44 = vpop.f32.mrb[11].mxu0  ;;  %v1395_v45 = vpop.f32.mrb[10].mxu1 }
 0x112   : > { %v2237_v46 = vadd.f32 %v1394_v41, %v530_v42  ;;  %v1317_v47 = vadd.f32 %v1316_v44, %v1315_v43  ;;  %v1396_v48 = vpop.f32.mrb[11].mxu1 }
 0x113   : > { %v1397_v49 = vadd.f32 %v1396_v48, %v1395_v45 }
 0x114   : > { %v535_v50 = vadd.f32 %v1317_v47, %v2222_v4  ;;  %v1318_v51 = vpop.f32.mrb[12].mxu0 }
 0x115   : > { %v1319_v52 = vpop.f32.mrb[13].mxu0  ;;  %v1398_v53 = vpop.f32.mrb[12].mxu1 }
 0x116   : > { %v2240_v54 = vadd.f32 %v1397_v49, %v535_v50  ;;  %v1320_v55 = vadd.f32 %v1319_v52, %v1318_v51  ;;  %v1399_v56 = vpop.f32.mrb[13].mxu1 }
 0x117   : > { %v1400_v57 = vadd.f32 %v1399_v56, %v1398_v53 }
 0x118   : > { %v540_v58 = vadd.f32 %v1320_v55, %v2222_v4  ;;  %v1321_v59 = vpop.f32.mrb[14].mxu0 }
 0x119   : > { %v1322_v60 = vpop.f32.mrb[15].mxu0  ;;  %v1401_v61 = vpop.f32.mrb[14].mxu1 }
 0x11a   : > { %v2243_v62 = vadd.f32 %v1400_v57, %v540_v58  ;;  %v1323_v63 = vadd.f32 %v1322_v60, %v1321_v59  ;;  %v1402_v0 = vpop.f32.mrb[15].mxu1 }
 0x11b   : > { %v1403_v1 = vadd.f32 %v1402_v0, %v1401_v61 }
 0x11c   : > { %v545_v2 = vadd.f32 %v1323_v63, %v2222_v4  ;;  %v1324_v3 = vpop.f32.mrb[16].mxu0 }
 0x11d   : > { %v1325_v5 = vpop.f32.mrb[17].mxu0  ;;  %v1404_v6 = vpop.f32.mrb[16].mxu1 }
 0x11e   : > { %v2246_v7 = vadd.f32 %v1403_v1, %v545_v2  ;;  %v1326_v8 = vadd.f32 %v1325_v5, %v1324_v3  ;;  %v1405_v9 = vpop.f32.mrb[17].mxu1 }
 0x11f   : > { %v1406_v10 = vadd.f32 %v1405_v9, %v1404_v6 }
 0x120   : > { %v550_v11 = vadd.f32 %v1326_v8, %v2222_v4  ;;  %v1327_v12 = vpop.f32.mrb[18].mxu0 }
 0x121   : > { %v1328_v13 = vpop.f32.mrb[19].mxu0  ;;  %v1407_v15 = vpop.f32.mrb[18].mxu1 }
 0x122   : > { %v2249_v16 = vadd.f32 %v1406_v10, %v550_v11  ;;  %v1329_v17 = vadd.f32 %v1328_v13, %v1327_v12  ;;  %v1408_v18 = vpop.f32.mrb[19].mxu1 }
 0x123   : > { %v1409_v19 = vadd.f32 %v1408_v18, %v1407_v15 }
 0x124   : > { %v555_v20 = vadd.f32 %v1329_v17, %v2222_v4  ;;  %v1330_v21 = vpop.f32.mrb[20].mxu0 }
 0x125   : > { %v1331_v23 = vpop.f32.mrb[21].mxu0  ;;  %v1410_v24 = vpop.f32.mrb[20].mxu1 }
 0x126   : > { %v2252_v25 = vadd.f32 %v1409_v19, %v555_v20  ;;  %v1332_v26 = vadd.f32 %v1331_v23, %v1330_v21  ;;  %v1411_v27 = vpop.f32.mrb[21].mxu1 }
 0x127   : > { %v1412_v28 = vadd.f32 %v1411_v27, %v1410_v24 }
 0x128   : > { %v560_v29 = vadd.f32 %v1332_v26, %v2222_v4  ;;  %v1333_v31 = vpop.f32.mrb[22].mxu0 }
 0x129   : > { %v1334_v32 = vpop.f32.mrb[23].mxu0  ;;  %v1413_v33 = vpop.f32.mrb[22].mxu1 }
 0x12a   : > { %v2255_v34 = vadd.f32 %v1412_v28, %v560_v29  ;;  %v1335_v35 = vadd.f32 %v1334_v32, %v1333_v31  ;;  %v1414_v36 = vpop.f32.mrb[23].mxu1 }
 0x12b   : > { %v1415_v37 = vadd.f32 %v1414_v36, %v1413_v33 }
 0x12c   : > { %v565_v39 = vadd.f32 %v1335_v35, %v2222_v4  ;;  %v1336_v40 = vpop.f32.mrb[24].mxu0 }
 0x12d   : > { %v1337_v41 = vpop.f32.mrb[25].mxu0  ;;  %v1416_v42 = vpop.f32.mrb[24].mxu1 }
 0x12e   : > { %v2258_v43 = vadd.f32 %v1415_v37, %v565_v39  ;;  %v1338_v44 = vadd.f32 %v1337_v41, %v1336_v40  ;;  %v1417_v45 = vpop.f32.mrb[25].mxu1 }
 0x12f   : > { %v1418_v47 = vadd.f32 %v1417_v45, %v1416_v42 }
 0x130   : > { %v570_v48 = vadd.f32 %v1338_v44, %v2222_v4  ;;  %v1339_v49 = vpop.f32.mrb[26].mxu0 }
 0x131   : > { %v1340_v50 = vpop.f32.mrb[27].mxu0  ;;  %v1419_v51 = vpop.f32.mrb[26].mxu1 }
 0x132   : > { %v715_v52 = vadd.f32 %v1418_v47, %v570_v48  ;;  %v1341_v53 = vadd.f32 %v1340_v50, %v1339_v49  ;;  %v1420_v55 = vpop.f32.mrb[27].mxu1 }
 0x133   : > { %v1421_v56 = vadd.f32 %v1420_v55, %v1419_v51 }
 0x134   : > { %v575_v57 = vadd.f32 %v1341_v53, %v2222_v4  ;;  %v1342_v58 = vpop.f32.mrb[28].mxu0 }
 0x135   : > { %v1343_v59 = vpop.f32.mrb[29].mxu0  ;;  %v1422_v60 = vpop.f32.mrb[28].mxu1 }
 0x136   : > { %v720_v61 = vadd.f32 %v1421_v56, %v575_v57  ;;  %v1344_v63 = vadd.f32 %v1343_v59, %v1342_v58  ;;  %v1423_v0 = vpop.f32.mrb[29].mxu1 }
 0x137   : > { %v1424_v1 = vadd.f32 %v1423_v0, %v1422_v60 }
 0x138   : > { %v580_v2 = vadd.f32 %v1344_v63, %v2222_v4  ;;  %v1345_v3 = vpop.f32.mrb[30].mxu0 }
 0x139   : > { %v1346_v5 = vpop.f32.mrb[31].mxu0  ;;  %v1425_v6 = vpop.f32.mrb[30].mxu1 }
 0x13a   : > { %v725_v8 = vadd.f32 %v1424_v1, %v580_v2  ;;  %v1347_v9 = vadd.f32 %v1346_v5, %v1345_v3  ;;  %v1426_v10 = vpop.f32.mrb[31].mxu1 }
 0x13b   : > { %v1427_v11 = vadd.f32 %v1426_v10, %v1425_v6 }
 0x13c   : > { %v585_v12 = vadd.f32 %v1347_v9, %v2222_v4  ;;  %v1460_v13 = vpop.f32.mrb[32].mxu0 }
 0x13d   : > { %v1496_v15 = vpop.f32.mrb[32].mxu1  ;;  %v1461_v17 = vpop.f32.mrb[33].mxu0 }
 0x13e   : > { %v730_v18 = vadd.f32 %v1427_v11, %v585_v12  ;;  %v1462_v19 = vadd.f32 %v1461_v17, %v1460_v13  ;;  %v1497_v20 = vpop.f32.mrb[33].mxu1 }
 0x13f   : > { %v1498_v21 = vadd.f32 %v1497_v20, %v1496_v15 }
 0x140   : > { %v1463_v23 = vpop.f32.mrb[34].mxu0  ;;  %v800_v24 = vadd.f32 %v1462_v19, %v2225_v14 }
 0x141   : > { %v1499_v26 = vpop.f32.mrb[34].mxu1  ;;  %v1464_v27 = vpop.f32.mrb[35].mxu0  ;;  %v2265_v28 = vadd.f32 %v1498_v21, %v715_v52 }
 0x142   : > { %v1465_v29 = vadd.f32 %v1464_v27, %v1463_v23  ;;  %v1500_v31 = vpop.f32.mrb[35].mxu1 }
 0x143   : > { %v1501_v32 = vadd.f32 %v1500_v31, %v1499_v26 }
 0x144   : > { %v1466_v33 = vpop.f32.mrb[36].mxu0  ;;  %v805_v4 = vadd.f32 %v1465_v29, %v2228_v22 }
 0x145   : > { %v1502_v35 = vpop.f32.mrb[36].mxu1  ;;  %v1467_v36 = vpop.f32.mrb[37].mxu0  ;;  %v2268_v37 = vadd.f32 %v1501_v32, %v720_v61 }
 0x146   : > { %v1468_v39 = vadd.f32 %v1467_v36, %v1466_v33  ;;  %v1503_v40 = vpop.f32.mrb[37].mxu1 }
 0x147   : > { %v1504_v41 = vadd.f32 %v1503_v40, %v1502_v35 }
 0x148   : > { %v1469_v42 = vpop.f32.mrb[38].mxu0  ;;  %v810_v14 = vadd.f32 %v1468_v39, %v2231_v30 }
 0x149   : > { %v1505_v44 = vpop.f32.mrb[38].mxu1  ;;  %v1470_v45 = vpop.f32.mrb[39].mxu0  ;;  %v2271_v47 = vadd.f32 %v1504_v41, %v725_v8 }
 0x14a   : > { %v1471_v48 = vadd.f32 %v1470_v45, %v1469_v42  ;;  %v1506_v49 = vpop.f32.mrb[39].mxu1 }
 0x14b   : > { %v1507_v50 = vadd.f32 %v1506_v49, %v1505_v44 }
 0x14c   : > { %v1472_v51 = vpop.f32.mrb[40].mxu0  ;;  %v815_v22 = vadd.f32 %v1471_v48, %v2234_v38 }
 0x14d   : > { %v1532_v52 = vpop.f32.mrb[40].mxu1  ;;  %v1473_v53 = vpop.f32.mrb[41].mxu0  ;;  %v2274_v55 = vadd.f32 %v1507_v50, %v730_v18 }
 0x14e   : > { %v2276_v56 = vadd.f32 %v1532_v52, %v805_v4  ;;  %v1474_v57 = vadd.f32 %v1473_v53, %v1472_v51  ;;  %v944_v58 = vpop.f32.mrb[41].mxu1 }
 0x14f   : > { %v2278_v59 = vadd.f32 %v944_v58, %v800_v24 }
 0x150   : > { %1025 = vmax.xlane.f32.xlu0 %v2276_v56  ;;  %v1475_v30 = vpop.f32.mrb[42].mxu0  ;;  %v820_v60 = vadd.f32 %v1474_v57, %v2237_v46 }
 0x151   : > { %v1535_v61 = vpop.f32.mrb[42].mxu1  ;;  %v1476_v63 = vpop.f32.mrb[43].mxu0 }
 0x152   : > { %v2282_v0 = vadd.f32 %v1535_v61, %v815_v22  ;;  %v1477_v38 = vadd.f32 %v1476_v63, %v1475_v30  ;;  %v954_v1 = vpop.f32.mrb[43].mxu1 }
 0x153   : > { %v2284_v2 = vadd.f32 %v954_v1, %v810_v14 }
 0x154   : > { %1029 = vmax.xlane.f32.xlu1 %v2282_v0  ;;  %1023 = vmax.xlane.f32.xlu0 %v2278_v59  ;;  %v1478_v3 = vpop.f32.mrb[44].mxu0  ;;  %v825_v5 = vadd.f32 %v1477_v38, %v2240_v54 }
 0x155   : > { %v1538_v6 = vpop.f32.mrb[44].mxu1  ;;  %v1479_v8 = vpop.f32.mrb[45].mxu0 }
 0x156   : > { %v2289_v9 = vadd.f32 %v1538_v6, %v825_v5  ;;  %v1480_v46 = vadd.f32 %v1479_v8, %v1478_v3  ;;  %v964_v10 = vpop.f32.mrb[45].mxu1 }
 0x157   : > { %v2291_v11 = vadd.f32 %v964_v10, %v820_v60 }
 0x158   : > { %1027 = vmax.xlane.f32.xlu1 %v2284_v2  ;;  %v1481_v12 = vpop.f32.mrb[46].mxu0  ;;  %v830_v13 = vadd.f32 %v1480_v46, %v2243_v62 }
 0x159   : > { %v1541_v15 = vpop.f32.mrb[46].mxu1  ;;  %1031 = vmax.xlane.f32.xlu0 %v2291_v11  ;;  %v1482_v17 = vpop.f32.mrb[47].mxu0 }
 0x15a   : > { %v1483_v18 = vadd.f32 %v1482_v17, %v1481_v12  ;;  %v974_v19 = vpop.f32.mrb[47].mxu1 }
 0x15b   : > { %v2296_v54 = vadd.f32 %v974_v19, %v830_v13 }
 0x15c   : > { %v835_v20 = vadd.f32 %v1483_v18, %v2246_v7  ;;  %1033 = vmax.xlane.f32.xlu1 %v2289_v9  ;;  %v1484_v21 = vpop.f32.mrb[48].mxu0 }
 0x15d   : > { %1035 = vmax.xlane.f32.xlu0 %v2296_v54  ;;  %v1485_v23 = vpop.f32.mrb[49].mxu0  ;;  %v1544_v24 = vpop.f32.mrb[48].mxu1 }
 0x15e   : > { %v1486_v26 = vadd.f32 %v1485_v23, %v1484_v21  ;;  %v984_v27 = vpop.f32.mrb[49].mxu1  ;;  %v2301_v62 = vadd.f32 %v1541_v15, %v835_v20 }
 0x160   : > { %v840_v29 = vadd.f32 %v1486_v26, %v2249_v16  ;;  %v1487_v31 = vpop.f32.mrb[50].mxu0  ;;  %1037 = vmax.xlane.f32.xlu1 %v2301_v62 }
 0x161   : > { %v1488_v32 = vpop.f32.mrb[51].mxu0  ;;  %v1547_v33 = vpop.f32.mrb[50].mxu1 }
 0x162   : > { %v2305_v4 = vadd.f32 %v984_v27, %v840_v29  ;;  %v1489_v7 = vadd.f32 %v1488_v32, %v1487_v31  ;;  %v994_v35 = vpop.f32.mrb[51].mxu1 }
 0x164   : > { %v845_v36 = vadd.f32 %v1489_v7, %v2252_v25  ;;  %v1490_v39 = vpop.f32.mrb[52].mxu0  ;;  %1039 = vmax.xlane.f32.xlu0 %v2305_v4 }
 0x165   : > { %v1550_v40 = vpop.f32.mrb[52].mxu1  ;;  %v1491_v41 = vpop.f32.mrb[53].mxu0 }
 0x166   : > { %v2310_v42 = vadd.f32 %v1550_v40, %v2268_v37  ;;  %v1492_v16 = vadd.f32 %v1491_v41, %v1490_v39  ;;  %v1004_v14 = vpop.f32.mrb[53].mxu1  ;;  %v2312_v44 = vadd.f32 %v1544_v24, %v845_v36 }
 0x167   : > { %v2315_v45 = vadd.f32 %v1004_v14, %v2265_v28 }
 0x168   : > { %v850_v48 = vadd.f32 %v1492_v16, %v2255_v34  ;;  %1049 = vmax.xlane.f32.xlu1 %v2310_v42  ;;  %v1493_v25 = vpop.f32.mrb[54].mxu0 }
 0x169   : > { %v1553_v49 = vpop.f32.mrb[54].mxu1  ;;  %1047 = vmax.xlane.f32.xlu0 %v2315_v45  ;;  %v1494_v50 = vpop.f32.mrb[55].mxu0 }
 0x16a   : > { %v2321_v51 = vadd.f32 %v1553_v49, %v2274_v55  ;;  %v1495_v37 = vadd.f32 %v1494_v50, %v1493_v25  ;;  %v1014_v22 = vpop.f32.mrb[55].mxu1  ;;  %v2323_v52 = vadd.f32 %v994_v35, %v850_v48 }
 0x16b   : > { %v2326_v53 = vadd.f32 %v1014_v22, %v2271_v47 }
 0x16c   : > { %v855_v28 = vadd.f32 %v1495_v37, %v2258_v43  ;;  %1041 = vmax.xlane.f32.xlu1 %v2312_v44 }
 0x16d   : > { %1043 = vmax.xlane.f32.xlu0 %v2323_v52 }
 0x16e   : > { %v2331_v34 = vadd.f32 %v1547_v33, %v855_v28 }
 0x170   : > { %1045 = vmax.xlane.f32.xlu1 %v2331_v34 }
 0x171   : > { %1051 = vmax.xlane.f32.xlu0 %v2326_v53 }
 0x174   : > { %1053 = vmax.xlane.f32.xlu1 %v2321_v51 }
 0x1dd   : > { %v1026_v55 = vpop.xlane.xlu0 %1025 }
 0x1de   : > { %v1056_v57 = vsub.f32 %v2276_v56, %v1026_v55 }
 0x1e0   : > { %v1073_v58 = vmul.f32 1.442695, %v1056_v57 }
 0x1e1   : > { %v1030_v47 = vpop.xlane.xlu1 %1029  ;;  %v1024_v30 = vpop.xlane.xlu0 %1023 }
 0x1e2   : > { %1679 = vpow2.f32 %v1073_v58  ;;  %v1058_v43 = vsub.f32 %v2282_v0, %v1030_v47  ;;  %v1055_v60 = vsub.f32 %v2278_v59, %v1024_v30 }
 0x1e4   : > { %v1077_v61 = vmul.f32 1.442695, %v1058_v43  ;;  %v1071_v63 = vmul.f32 1.442695, %v1055_v60 }
 0x1e5   : > { %v1028_v38 = vpop.xlane.xlu1 %1027 }
 0x1e6   : > { %1681 = vpow2.f32 %v1077_v61  ;;  %v1057_v1 = vsub.f32 %v2284_v2, %v1028_v38  ;;  %v1032_v3 = vpop.xlane.xlu0 %1031 }
 0x1e7   : > { %1683 = vpow2.f32 %v1071_v63  ;;  %v1059_v5 = vsub.f32 %v2291_v11, %v1032_v3 }
 0x1e8   : > { %v1075_v6 = vmul.f32 1.442695, %v1057_v1 }
 0x1e9   : > { %v1034_v56 = vpop.xlane.xlu1 %1033  ;;  %v1079_v10 = vmul.f32 1.442695, %v1059_v5 }
 0x1ea   : > { %1685 = vpow2.f32 %v1075_v6  ;;  %v1060_v8 = vsub.f32 %v2289_v9, %v1034_v56  ;;  %v1036_v46 = vpop.xlane.xlu0 %1035 }
 0x1eb   : > { %v1061_v0 = vsub.f32 %v2296_v54, %v1036_v46 }
 0x1ec   : > { %v2343_v59 = vpop.eup %1679  ;;  %v1081_v12 = vmul.f32 1.442695, %v1060_v8 }
 0x1ed   : > { %1105 = vadd.xlane.f32.xlu1 %v2343_v59  ;;  %v1038_v13 = vpop.xlane.xlu1 %1037  ;;  %v1083_v11 = vmul.f32 1.442695, %v1061_v0 }
 0x1ee   : > { %1687 = vpow2.f32 %v1081_v12  ;;  %v1062_v2 = vsub.f32 %v2301_v62, %v1038_v13 }
 0x1ef   : > { %1689 = vpow2.f32 %v1079_v10 }
 0x1f0   : > { %v2347_v15 = vpop.eup %1681  ;;  %v1085_v17 = vmul.f32 1.442695, %v1062_v2 }
 0x1f1   : > { %v2349_v18 = vpop.eup %1683  ;;  %1109 = vadd.xlane.f32.xlu1 %v2347_v15  ;;  %v1040_v9 = vpop.xlane.xlu0 %1039 }
 0x1f2   : > { %1691 = vpow2.f32 %v1085_v17  ;;  %1103 = vadd.xlane.f32.xlu0 %v2349_v18  ;;  %v1063_v19 = vsub.f32 %v2305_v4, %v1040_v9 }
 0x1f3   : > { %1693 = vpow2.f32 %v1083_v11 }
 0x1f4   : > { %v2354_v54 = vpop.eup %1685  ;;  %v1087_v20 = vmul.f32 1.442695, %v1063_v19 }
 0x1f5   : > { %v1050_v21 = vpop.xlane.xlu1 %1049 }
 0x1f6   : > { %1695 = vpow2.f32 %v1087_v20  ;;  %v1068_v23 = vsub.f32 %v2310_v42, %v1050_v21  ;;  %1107 = vadd.xlane.f32.xlu0 %v2354_v54  ;;  %v1048_v24 = vpop.xlane.xlu0 %1047 }
 0x1f7   : > { %v1067_v26 = vsub.f32 %v2315_v45, %v1048_v24 }
 0x1f8   : > { %v2359_v27 = vpop.eup %1687  ;;  %v1097_v62 = vmul.f32 1.442695, %v1068_v23 }
 0x1f9   : > { %v2361_v29 = vpop.eup %1689  ;;  %v1095_v31 = vmul.f32 1.442695, %v1067_v26  ;;  %v1042_v32 = vpop.xlane.xlu1 %1041  ;;  %1113 = vadd.xlane.f32.xlu1 %v2359_v27 }
 0x1fa   : > { %1697 = vpow2.f32 %v1097_v62  ;;  %v1064_v33 = vsub.f32 %v2312_v44, %v1042_v32  ;;  %1111 = vadd.xlane.f32.xlu0 %v2361_v29  ;;  %v1044_v4 = vpop.xlane.xlu0 %1043 }
 0x1fb   : > { %1699 = vpow2.f32 %v1095_v31  ;;  %v1065_v7 = vsub.f32 %v2323_v52, %v1044_v4 }
 0x1fc   : > { %v2367_v35 = vpop.eup %1691  ;;  %v1089_v36 = vmul.f32 1.442695, %v1064_v33 }
 0x1fd   : > { %v2369_v39 = vpop.eup %1693  ;;  %v1091_v40 = vmul.f32 1.442695, %v1065_v7  ;;  %v1046_v41 = vpop.xlane.xlu1 %1045  ;;  %1117 = vadd.xlane.f32.xlu1 %v2367_v35 }
 0x1fe   : > { %1701 = vpow2.f32 %v1089_v36  ;;  %1115 = vadd.xlane.f32.xlu0 %v2369_v39  ;;  %v1066_v42 = vsub.f32 %v2331_v34, %v1046_v41  ;;  %v1052_v16 = vpop.xlane.xlu0 %1051 }
 0x1ff   : > { %1703 = vpow2.f32 %v1091_v40  ;;  %v1069_v14 = vsub.f32 %v2326_v53, %v1052_v16 }
 0x200   : > { %v2375_v44 = vpop.eup %1695  ;;  %v1093_v45 = vmul.f32 1.442695, %v1066_v42 }
 0x201   : > { %v1099_v48 = vmul.f32 1.442695, %v1069_v14  ;;  %v1054_v25 = vpop.xlane.xlu1 %1053 }
 0x202   : > { %1705 = vpow2.f32 %v1093_v45  ;;  %v1070_v49 = vsub.f32 %v2321_v51, %v1054_v25  ;;  %1119 = vadd.xlane.f32.xlu0 %v2375_v44 }
 0x203   : > { %1707 = vpow2.f32 %v1099_v48 }
 0x204   : > { %v2379_v50 = vpop.eup %1697  ;;  %v1101_v37 = vmul.f32 1.442695, %v1070_v49 }
 0x205   : > { %v2381_v22 = vpop.eup %1699  ;;  %1129 = vadd.xlane.f32.xlu1 %v2379_v50 }
 0x206   : > { %1709 = vpow2.f32 %v1101_v37  ;;  %1127 = vadd.xlane.f32.xlu0 %v2381_v22 }
 0x208   : > { %v2385_v52 = vpop.eup %1701 }
 0x209   : > { %v2387_v53 = vpop.eup %1703  ;;  %1121 = vadd.xlane.f32.xlu1 %v2385_v52 }
 0x20a   : > { %1123 = vadd.xlane.f32.xlu0 %v2387_v53 }
 0x20c   : > { %v2391_v51 = vpop.eup %1705 }
 0x20d   : > { %v2393_v28 = vpop.eup %1707  ;;  %1125 = vadd.xlane.f32.xlu1 %v2391_v51 }
 0x20e   : > { %1131 = vadd.xlane.f32.xlu0 %v2393_v28 }
 0x210   : > { %v2397_v34 = vpop.eup %1709 }
 0x211   : > { %1133 = vadd.xlane.f32.xlu1 %v2397_v34 }
 0x27a   : > { %v1106_v55 = vpop.xlane.xlu1 %1105 }
 0x27b   : > { %1711 = vrcp.f32 %v1106_v55 }
 0x27e   : > { %v1110_v57 = vpop.xlane.xlu1 %1109 }
 0x27f   : > { %1713 = vrcp.f32 %v1110_v57  ;;  %v1104_v58 = vpop.xlane.xlu0 %1103 }
 0x280   : > { %1715 = vrcp.f32 %v1104_v58 }
 0x283   : > { %v1108_v47 = vpop.xlane.xlu0 %1107 }
 0x284   : > { %1717 = vrcp.f32 %v1108_v47 }
 0x285   : > { %v1712_v30 = vpop.eup %1711 }
 0x286   : > { %v1138_v43 = vmul.f32 %v1712_v30, %v2343_v59  ;;  %v1114_v60 = vpop.xlane.xlu1 %1113 }
 0x287   : > { %1719 = vrcp.f32 %v1114_v60  ;;  %v1112_v61 = vpop.xlane.xlu0 %1111 }
 0x288   : > { %1169 = vst.msk [vmem:[%s2404_s22 + $0x8] sm:$0xff] %vm1167_vm1, %v1138_v43  ;;  %1721 = vrcp.f32 %v1112_v61 }
 0x289   : > { %v1714_v63 = vpop.eup %1713 }
 0x28a   : > { %v1716_v38 = vpop.eup %1715  ;;  %v1142_v1 = vmul.f32 %v1714_v63, %v2347_v15  ;;  %v1118_v3 = vpop.xlane.xlu1 %1117 }
 0x28b   : > { %v1136_v5 = vmul.f32 %v1716_v38, %v2349_v18  ;;  %v1116_v6 = vpop.xlane.xlu0 %1115  ;;  %1723 = vrcp.f32 %v1118_v3 }
 0x28c   : > { %1171 = vst.msk [vmem:[%s2404_s22 + $0x18] sm:$0xff] %vm1167_vm1, %v1142_v1  ;;  %1725 = vrcp.f32 %v1116_v6 }
 0x28d   : > { %1168 = vst.msk [vmem:[%s2404_s22] sm:$0xff] %vm1167_vm1, %v1136_v5 }
 0x28e   : > { %v1718_v56 = vpop.eup %1717 }
 0x28f   : > { %v1140_v8 = vmul.f32 %v1718_v56, %v2354_v54  ;;  %v1120_v46 = vpop.xlane.xlu0 %1119 }
 0x290   : > { %1727 = vrcp.f32 %v1120_v46 }
 0x291   : > { %v1720_v10 = vpop.eup %1719  ;;  %1170 = vst.msk [vmem:[%s2404_s22 + $0x10] sm:$0xff] %vm1167_vm1, %v1140_v8 }
 0x292   : > { %v1722_v0 = vpop.eup %1721  ;;  %v1146_v59 = vmul.f32 %v1720_v10, %v2359_v27  ;;  %v1130_v12 = vpop.xlane.xlu1 %1129 }
 0x293   : > { %v1144_v13 = vmul.f32 %v1722_v0, %v2361_v29  ;;  %1729 = vrcp.f32 %v1130_v12  ;;  %v1128_v2 = vpop.xlane.xlu0 %1127 }
 0x294   : > { %1173 = vst.msk [vmem:[%s2404_s22 + $0x28] sm:$0xff] %vm1167_vm1, %v1146_v59  ;;  %1731 = vrcp.f32 %v1128_v2 }
 0x295   : > { %v1724_v11 = vpop.eup %1723  ;;  %1172 = vst.msk [vmem:[%s2404_s22 + $0x20] sm:$0xff] %vm1167_vm1, %v1144_v13 }
 0x296   : > { %v1726_v15 = vpop.eup %1725  ;;  %v1150_v17 = vmul.f32 %v1724_v11, %v2367_v35  ;;  %v1122_v18 = vpop.xlane.xlu1 %1121 }
 0x297   : > { %v1148_v9 = vmul.f32 %v1726_v15, %v2369_v39  ;;  %1733 = vrcp.f32 %v1122_v18  ;;  %v1124_v19 = vpop.xlane.xlu0 %1123 }
 0x298   : > { %1175 = vst.msk [vmem:[%s2404_s22 + $0x38] sm:$0xff] %vm1167_vm1, %v1150_v17  ;;  %1735 = vrcp.f32 %v1124_v19 }
 0x299   : > { %1174 = vst.msk [vmem:[%s2404_s22 + $0x30] sm:$0xff] %vm1167_vm1, %v1148_v9 }
 0x29a   : > { %v1728_v54 = vpop.eup %1727  ;;  %v1126_v20 = vpop.xlane.xlu1 %1125 }
 0x29b   : > { %v1152_v21 = vmul.f32 %v1728_v54, %v2375_v44  ;;  %1737 = vrcp.f32 %v1126_v20  ;;  %v1132_v23 = vpop.xlane.xlu0 %1131 }
 0x29c   : > { %1739 = vrcp.f32 %v1132_v23 }
 0x29d   : > { %v1730_v24 = vpop.eup %1729  ;;  %1176 = vst.msk [vmem:[%s2404_s22 + $0x40] sm:$0xff] %vm1167_vm1, %v1152_v21 }
 0x29e   : > { %v1732_v26 = vpop.eup %1731  ;;  %v1162_v27 = vmul.f32 %v1730_v24, %v2379_v50  ;;  %v1134_v62 = vpop.xlane.xlu1 %1133 }
 0x29f   : > { %v1160_v29 = vmul.f32 %v1732_v26, %v2381_v22  ;;  %1741 = vrcp.f32 %v1134_v62 }
 0x2a0   : > { %1181 = vst.msk [vmem:[%s2404_s22 + $0x68] sm:$0xff] %vm1167_vm1, %v1162_v27 }
 0x2a1   : > { %v1734_v31 = vpop.eup %1733  ;;  %1180 = vst.msk [vmem:[%s2404_s22 + $0x60] sm:$0xff] %vm1167_vm1, %v1160_v29 }
 0x2a2   : > { %v1736_v32 = vpop.eup %1735  ;;  %v1154_v33 = vmul.f32 %v1734_v31, %v2385_v52 }
 0x2a3   : > { %v1156_v4 = vmul.f32 %v1736_v32, %v2387_v53 }
 0x2a4   : > { %1177 = vst.msk [vmem:[%s2404_s22 + $0x48] sm:$0xff] %vm1167_vm1, %v1154_v33 }
 0x2a5   : > { %v1738_v7 = vpop.eup %1737  ;;  %1178 = vst.msk [vmem:[%s2404_s22 + $0x50] sm:$0xff] %vm1167_vm1, %v1156_v4 }
 0x2a6   : > { %v1740_v35 = vpop.eup %1739  ;;  %v1158_v36 = vmul.f32 %v1738_v7, %v2391_v51 }
 0x2a7   : > { %v1164_v39 = vmul.f32 %v1740_v35, %v2393_v28 }
 0x2a8   : > { %1179 = vst.msk [vmem:[%s2404_s22 + $0x58] sm:$0xff] %vm1167_vm1, %v1158_v36 }
 0x2a9   : > { %v1742_v40 = vpop.eup %1741  ;;  %1182 = vst.msk [vmem:[%s2404_s22 + $0x70] sm:$0xff] %vm1167_vm1, %v1164_v39 }
 0x2aa   : > { %v1166_v41 = vmul.f32 %v1742_v40, %v2397_v34 }
 0x2ac   : > { %1183 = vst.msk [vmem:[%s2404_s22 + $0x78] sm:$0xff] %vm1167_vm1, %v1166_v41 }
 0x2ad PF: > { %s13_s12 = sadd.s32 1, %s1749_s12  }
 0x2ae   : > { %p10_p4 = scmp.ge.s32.totalorder %s13_s12, 4  }
 0x2b0   :  { %12 = sbr.rel (!%p10_p4) target bundleno = 1 (0x1), region = 62 }

</bundles_post_ra>
